<compile_context>
chip_gen: v7x
topology: tpu7x:2x2x1
jax: 0.10.0
libtpu: 0.0.40
codegen_flags: <defaults>
</compile_context>

<pallas_src>
import functools
import math

import jax
import jax.numpy as jnp
from jax.experimental import pallas as pl
from jax.experimental.pallas import tpu as pltpu


def _round_up(x: int, m: int) -> int:
    return ((x + m - 1) // m) * m


def _cdiv(a: int, b: int) -> int:
    return (a + b - 1) // b


def _vmem_ceiling_bytes() -> int:
    """Per-generation VMEM ceiling: physical capacity minus ~16 MiB headroom
    for Mosaic internal scratch (~48 MiB on v7x, ~112 MiB on v5e/v6e)."""
    cap = 64 << 20  # conservative fallback (= v7x physical VMEM)
    try:
        cap = int(pltpu.get_tpu_info().vmem_capacity_bytes)
    except Exception:
        pass
    return max(cap - (16 << 20), 32 << 20)


def _choose_token_tiling(M: int, tm_target: int = 512):
    """Pick (tm, M_pad, num_tiles): tm a multiple of 8 with minimal M
    overshoot, and an even tile count >= 2 when M > 8 so both v7x TCs work."""
    m8 = _round_up(max(M, 1), 8)
    nt = max(1, _cdiv(m8, tm_target))
    if m8 > 8:
        if nt == 1:
            nt = 2          # guarantee >= 2 tiles for v7x megacore
        elif nt % 2 == 1:
            nt += 1         # even tile count -> balanced TC split
    tm = _round_up(_cdiv(m8, nt), 8)
    return tm, nt * tm, nt


def _mlp_fused_kernel(x_ref, *refs, num_layers: int, out_dim: int, compute_dtype):
    """Fused MLP body.

    refs = (w0, b0, w1, b1, ..., w_{L-1}, b_{L-1}, out_ref)
      x_ref : (tm, K0)              activation tile, TRUE feature width (f32)
      w_i   : (Kin_i, Npad_i)       pre-transposed weights; Kin_0 = K0 exact,
                                    Kin_{i>0} = Npad_{i-1}; N padded to 128
      b_i   : (1, Npad_i)           zero-padded bias (f32)
      out   : (tm, out_dim)         TRUE output width (f32)
    Padded lanes stay exactly zero through dot -> +bias -> ReLU, so they never
    perturb real outputs; the final store slices back to out_dim columns.
    """
    o_ref = refs[-1]
    wb = refs[:-1]

    h = x_ref[...]
    for i in range(num_layers):
        w = wb[2 * i][...]             # compute_dtype
        b = wb[2 * i + 1][...]         # f32, (1, Npad_i)
        acc = jnp.dot(h.astype(compute_dtype), w,
                      preferred_element_type=jnp.float32)
        acc = acc + b                  # f32 epilogue
        if i < num_layers - 1:
            h = jnp.maximum(acc, 0.0)  # ReLU on hidden layers only
        else:
            o_ref[...] = acc[:, :out_dim].astype(o_ref.dtype)


def mlp_pallas_forward(x, wt_pads, b_pads, true_dims, out_dim, *,
                       compute_dtype=jnp.float32, tm_target=512):
    """x: (M, input_dim) f32.  wt_pads[i]: (Kin_i, Npad_i).  Returns (M, out_dim) f32."""
    M, K0 = x.shape
    num_layers = len(wt_pads)

    tm, M_pad, _ = _choose_token_tiling(M, tm_target)
    x_in = x if M_pad == M else jnp.pad(x, ((0, M_pad - M), (0, 0)))

    kernel = functools.partial(_mlp_fused_kernel, num_layers=num_layers,
                               out_dim=out_dim, compute_dtype=compute_dtype)

    # x / out tiles stream over the grid; weights & biases use a constant
    # index_map so Pallas keeps them resident in VMEM (no re-DMA per step).
    in_specs = [pl.BlockSpec((tm, K0), lambda i: (i, 0))]
    flat_wb = []
    for wt, b in zip(wt_pads, b_pads):
        in_specs.append(pl.BlockSpec(wt.shape, lambda i: (0, 0)))
        in_specs.append(pl.BlockSpec(b.shape, lambda i: (0, 0)))
        flat_wb.extend([wt, b])

    # Advisory cost estimate from TRUE (unpadded) dims.
    flops = 2 * M * sum(n_in * n_out for n_in, n_out in true_dims)
    true_param_bytes = sum(n_in * n_out * 4 + n_out * 4 for n_in, n_out in true_dims)
    bytes_accessed = M * K0 * 4 + true_param_bytes + M * out_dim * 4

    # VMEM budget: double-buffered x/out tiles + resident params (x2 buffers)
    # + per-layer intermediate activations + slack.
    param_bytes = (sum(int(w.size) * w.dtype.itemsize for w in wt_pads)
                   + sum(int(b.size) * b.dtype.itemsize for b in b_pads))
    max_width = max(max(w.shape[1] for w in wt_pads), K0)
    vmem_need = (2 * tm * (K0 + out_dim) * 4
                 + 2 * param_bytes
                 + num_layers * tm * max_width * 4
                 + (4 << 20))
    vmem_limit = int(min(max(vmem_need, 16 << 20), _vmem_ceiling_bytes()))

    out = pl.pallas_call(
        kernel,
        out_shape=jax.ShapeDtypeStruct((M_pad, out_dim), jnp.float32),
        grid_spec=pltpu.PrefetchScalarGridSpec(
            num_scalar_prefetch=0,
            grid=(M_pad // tm,),
            in_specs=in_specs,
            out_specs=pl.BlockSpec((tm, out_dim), lambda i: (i, 0)),
        ),
        compiler_params=pltpu.CompilerParams(
            dimension_semantics=("parallel",),   # token tiles split across TCs
            vmem_limit_bytes=vmem_limit,
        ),
        cost_estimate=pl.CostEstimate(
            flops=flops, transcendentals=0, bytes_accessed=bytes_accessed),
    )(x_in, *flat_wb)

    return out if M_pad == M else out[:M]


class MLPPallas:
    """Mirror of the PyTorch MLP module using one fused Pallas kernel."""

    def __init__(self, input_dim, hidden_dim, output_dim, num_layers, key, *,
                 compute_dtype=jnp.float32):
        self.num_layers = num_layers
        self.output_dim = output_dim
        self.compute_dtype = compute_dtype
        h = [hidden_dim] * (num_layers - 1)
        dims_in = [input_dim] + h
        dims_out = h + [output_dim]
        self.true_dims = list(zip(dims_in, dims_out))

        self.params = []      # f32 master copies (PyTorch (out,in) layout) for reference
        self._wt_pads = []    # (Kin, Npad) pre-transposed, zero-padded, compute_dtype
        self._b_pads = []     # (1, Npad) f32, zero-padded
        prev_width = input_dim            # layer-0 contraction dim stays UNpadded
        for n_in, n_out in zip(dims_in, dims_out):
            key, wk, bk = jax.random.split(key, 3)
            bound = 1.0 / math.sqrt(n_in)   # mimic nn.Linear default init
            w = jax.random.uniform(wk, (n_out, n_in), jnp.float32, -bound, bound)
            b = jax.random.uniform(bk, (n_out,), jnp.float32, -bound, bound)
            self.params.append((w, b))

            out_pad = _round_up(n_out, 128)   # lane-dense N for the MXU
            wt = (jnp.zeros((prev_width, out_pad), jnp.float32)
                  .at[:n_in, :n_out].set(w.T))
            self._wt_pads.append(wt.astype(compute_dtype))
            self._b_pads.append(
                jnp.zeros((1, out_pad), jnp.float32).at[0, :n_out].set(b))
            prev_width = out_pad

    def __call__(self, x):
        lead = x.shape[:-1]
        xf = x.reshape(-1, x.shape[-1])
        out = mlp_pallas_forward(xf, self._wt_pads, self._b_pads, self.true_dims,
                                 self.output_dim, compute_dtype=self.compute_dtype)
        return out.reshape(*lead, out.shape[-1])


def mlp_reference(x, params, num_layers):
    lead = x.shape[:-1]
    xf = x.reshape(-1, x.shape[-1])
    for i, (w, b) in enumerate(params):
        xf = xf @ w.T + b
        if i < num_layers - 1:
            xf = jnp.maximum(xf, 0.0)
    return xf.reshape(*lead, xf.shape[-1])


if __name__ == "__main__":
    key = jax.random.PRNGKey(0)
    key, xkey, mkey = jax.random.split(key, 3)

    batch, seq = 2, 8
    input_dim, hidden_dim, output_dim, num_layers = 16, 32, 4, 3

    x = jax.random.normal(xkey, (batch, seq, input_dim), jnp.float32)

    # f32 MXU feed: tight check against the pure-JAX reference.
    mlp_f32 = MLPPallas(input_dim, hidden_dim, output_dim, num_layers, mkey,
                        compute_dtype=jnp.float32)
    out_f32 = jax.block_until_ready(mlp_f32(x))
    ref = mlp_reference(x, mlp_f32.params, num_layers)
    assert out_f32.shape == (batch, seq, output_dim), out_f32.shape
    assert jnp.allclose(out_f32, ref, atol=1e-5, rtol=1e-5), "f32 mismatch vs reference"

    # bf16 MXU feed (production path): f32 accumulation, looser tolerance.
    mlp_bf16 = MLPPallas(input_dim, hidden_dim, output_dim, num_layers, mkey,
                         compute_dtype=jnp.bfloat16)
    out_bf16 = jax.block_until_ready(mlp_bf16(x))
    assert out_bf16.shape == (batch, seq, output_dim), out_bf16.shape
    assert jnp.allclose(out_bf16, ref, atol=5e-2, rtol=5e-2), "bf16 mismatch vs reference"

    # Ragged-M path (exercises M padding + even tile split).
    x2 = jax.random.normal(key, (13, input_dim), jnp.float32)
    out2 = jax.block_until_ready(mlp_f32(x2))
    ref2 = mlp_reference(x2, mlp_f32.params, num_layers)
    assert out2.shape == (13, output_dim)
    assert jnp.allclose(out2, ref2, atol=1e-5, rtol=1e-5), "ragged-M mismatch"

    print("KERNEL_OK")
</pallas_src>

<mosaic_0001>
module attributes {stable_mosaic.version = 11 : i64} {
  func.func @_mlp_fused_kernel(%arg0: i32, %arg1: memref<8x16xf32, #tpu.memory_space<vmem>>, %arg2: memref<16x128xf32, #tpu.memory_space<vmem>>, %arg3: memref<1x128xf32, #tpu.memory_space<vmem>>, %arg4: memref<128x128xf32, #tpu.memory_space<vmem>>, %arg5: memref<1x128xf32, #tpu.memory_space<vmem>>, %arg6: memref<128x128xf32, #tpu.memory_space<vmem>>, %arg7: memref<1x128xf32, #tpu.memory_space<vmem>>, %arg8: memref<8x4xf32, #tpu.memory_space<vmem>>) attributes {dimension_semantics = [#tpu.dimension_semantics<parallel>], iteration_bounds = array<i64: 2>, scalar_prefetch = 0 : i64, scratch_operands = 0 : i64, tpu.core_type = #tpu.core_type<tc>, window_params = [{transform_indices = @transform_0, window_bounds = array<i64: 8, 16>}, {pipeline_mode = #tpu.pipeline_mode<synchronous>, transform_indices = @transform_1, window_bounds = array<i64: 16, 128>}, {pipeline_mode = #tpu.pipeline_mode<synchronous>, transform_indices = @transform_2, window_bounds = array<i64: 1, 128>}, {pipeline_mode = #tpu.pipeline_mode<synchronous>, transform_indices = @transform_3, window_bounds = array<i64: 128, 128>}, {pipeline_mode = #tpu.pipeline_mode<synchronous>, transform_indices = @transform_4, window_bounds = array<i64: 1, 128>}, {pipeline_mode = #tpu.pipeline_mode<synchronous>, transform_indices = @transform_5, window_bounds = array<i64: 128, 128>}, {pipeline_mode = #tpu.pipeline_mode<synchronous>, transform_indices = @transform_6, window_bounds = array<i64: 1, 128>}, {transform_indices = @transform_7, window_bounds = array<i64: 8, 4>}]} {
    %c0 = arith.constant 0 : index
    %c0_0 = arith.constant 0 : index
    %0 = vector.load %arg1[%c0, %c0_0] : memref<8x16xf32, #tpu.memory_space<vmem>>, vector<8x16xf32>
    %c0_1 = arith.constant 0 : index
    %c0_2 = arith.constant 0 : index
    %1 = vector.load %arg2[%c0_1, %c0_2] : memref<16x128xf32, #tpu.memory_space<vmem>>, vector<16x128xf32>
    %c0_3 = arith.constant 0 : index
    %c0_4 = arith.constant 0 : index
    %2 = vector.load %arg3[%c0_3, %c0_4] : memref<1x128xf32, #tpu.memory_space<vmem>>, vector<1x128xf32>
    %cst = arith.constant dense<0.000000e+00> : vector<8x128xf32>
    %3 = tpu.matmul %0, %1, %cst {dimension_numbers = #tpu.dot_dimension_numbers<[1], [0], [0], [1], [0, 0, 1, 1], [], []>} : vector<8x16xf32>, vector<16x128xf32>, vector<8x128xf32> -> vector<8x128xf32>
    %4 = vector.broadcast %2 : vector<1x128xf32> to vector<8x128xf32>
    %5 = arith.addf %3, %4 : vector<8x128xf32>
    %cst_5 = arith.constant 0.000000e+00 : f32
    %6 = vector.broadcast %cst_5 : f32 to vector<8x128xf32>
    %7 = arith.maximumf %5, %6 : vector<8x128xf32>
    %c0_6 = arith.constant 0 : index
    %c0_7 = arith.constant 0 : index
    %8 = vector.load %arg4[%c0_6, %c0_7] : memref<128x128xf32, #tpu.memory_space<vmem>>, vector<128x128xf32>
    %c0_8 = arith.constant 0 : index
    %c0_9 = arith.constant 0 : index
    %9 = vector.load %arg5[%c0_8, %c0_9] : memref<1x128xf32, #tpu.memory_space<vmem>>, vector<1x128xf32>
    %cst_10 = arith.constant dense<0.000000e+00> : vector<8x128xf32>
    %10 = tpu.matmul %7, %8, %cst_10 {dimension_numbers = #tpu.dot_dimension_numbers<[1], [0], [0], [1], [0, 0, 1, 1], [], []>} : vector<8x128xf32>, vector<128x128xf32>, vector<8x128xf32> -> vector<8x128xf32>
    %11 = vector.broadcast %9 : vector<1x128xf32> to vector<8x128xf32>
    %12 = arith.addf %10, %11 : vector<8x128xf32>
    %cst_11 = arith.constant 0.000000e+00 : f32
    %13 = vector.broadcast %cst_11 : f32 to vector<8x128xf32>
    %14 = arith.maximumf %12, %13 : vector<8x128xf32>
    %c0_12 = arith.constant 0 : index
    %c0_13 = arith.constant 0 : index
    %15 = vector.load %arg6[%c0_12, %c0_13] : memref<128x128xf32, #tpu.memory_space<vmem>>, vector<128x128xf32>
    %c0_14 = arith.constant 0 : index
    %c0_15 = arith.constant 0 : index
    %16 = vector.load %arg7[%c0_14, %c0_15] : memref<1x128xf32, #tpu.memory_space<vmem>>, vector<1x128xf32>
    %cst_16 = arith.constant dense<0.000000e+00> : vector<8x128xf32>
    %17 = tpu.matmul %14, %15, %cst_16 {dimension_numbers = #tpu.dot_dimension_numbers<[1], [0], [0], [1], [0, 0, 1, 1], [], []>} : vector<8x128xf32>, vector<128x128xf32>, vector<8x128xf32> -> vector<8x128xf32>
    %18 = vector.broadcast %16 : vector<1x128xf32> to vector<8x128xf32>
    %19 = arith.addf %17, %18 : vector<8x128xf32>
    %20 = vector.extract_strided_slice %19 {offsets = [0, 0], sizes = [8, 4], strides = [1, 1]} : vector<8x128xf32> to vector<8x4xf32>
    %c0_17 = arith.constant 0 : index
    %c0_18 = arith.constant 0 : index
    %21 = vector.load %arg8[%c0_17, %c0_18] : memref<8x4xf32, #tpu.memory_space<vmem>>, vector<8x4xf32>
    tpu.vector_store %arg8[%c0_17, %c0_18], %20 {strides = array<i32>} : memref<8x4xf32, #tpu.memory_space<vmem>>, vector<8x4xf32>,
    return
  }
  func.func @transform_0(%arg0: i32) -> (i32, i32) {
    %c0_i32 = arith.constant 0 : i32
    %c0_i32_0 = arith.constant 0 : i32
    return %arg0, %c0_i32 : i32, i32
  }
  func.func @transform_1(%arg0: i32) -> (i32, i32) {
    %c0_i32 = arith.constant 0 : i32
    %c0_i32_0 = arith.constant 0 : i32
    %c0_i32_1 = arith.constant 0 : i32
    return %c0_i32, %c0_i32_0 : i32, i32
  }
  func.func @transform_2(%arg0: i32) -> (i32, i32) {
    %c0_i32 = arith.constant 0 : i32
    %c0_i32_0 = arith.constant 0 : i32
    %c0_i32_1 = arith.constant 0 : i32
    return %c0_i32, %c0_i32_0 : i32, i32
  }
  func.func @transform_3(%arg0: i32) -> (i32, i32) {
    %c0_i32 = arith.constant 0 : i32
    %c0_i32_0 = arith.constant 0 : i32
    %c0_i32_1 = arith.constant 0 : i32
    return %c0_i32, %c0_i32_0 : i32, i32
  }
  func.func @transform_4(%arg0: i32) -> (i32, i32) {
    %c0_i32 = arith.constant 0 : i32
    %c0_i32_0 = arith.constant 0 : i32
    %c0_i32_1 = arith.constant 0 : i32
    return %c0_i32, %c0_i32_0 : i32, i32
  }
  func.func @transform_5(%arg0: i32) -> (i32, i32) {
    %c0_i32 = arith.constant 0 : i32
    %c0_i32_0 = arith.constant 0 : i32
    %c0_i32_1 = arith.constant 0 : i32
    return %c0_i32, %c0_i32_0 : i32, i32
  }
  func.func @transform_6(%arg0: i32) -> (i32, i32) {
    %c0_i32 = arith.constant 0 : i32
    %c0_i32_0 = arith.constant 0 : i32
    %c0_i32_1 = arith.constant 0 : i32
    return %c0_i32, %c0_i32_0 : i32, i32
  }
  func.func @transform_7(%arg0: i32) -> (i32, i32) {
    %c0_i32 = arith.constant 0 : i32
    %c0_i32_0 = arith.constant 0 : i32
    return %arg0, %c0_i32 : i32, i32
  }
}

</mosaic_0001>

<bundles_post_ra>
// kernel: tpu_custom_call.1
= control target key start
LH: loop header
LB: loop body
LE: loop exit
PB: predicated region body
PF: predicated region fallthrough
CT: control target
= control target key end

     0   :  { %12 = vsyncpa [#allocation3], 0  ;;  %s1415_s0 = inlined_call_operand.hbm [shape: f32[16,16], index: 0, kind: input, shape index: {}]   ;;  %s1416_s1 = inlined_call_operand.hbm [shape: f32[16,128], index: 1, kind: input, shape index: {}]   ;;  %s1417_s2 = inlined_call_operand.vmem [shape: f32[1,128], index: 2, kind: input, shape index: {}]   ;;  %s1418_s3 = inlined_call_operand.hbm [shape: f32[128,128], index: 3, kind: input, shape index: {}]   ;;  %s1419_s4 = inlined_call_operand.vmem [shape: f32[1,128], index: 4, kind: input, shape index: {}]   ;;  %s1420_s5 = inlined_call_operand.hbm [shape: f32[128,128], index: 5, kind: input, shape index: {}]   ;;  %s1421_s6 = inlined_call_operand.vmem [shape: f32[1,128], index: 6, kind: input, shape index: {}]   ;;  %s1422_s7 = inlined_call_operand.vmem [shape: f32[16,4], index: 7, kind: output, shape index: {}]  }
   0x1   :  { %14 = vsyncpa [#allocation3 + $0x1], 0 }
   0x2   :  { %15 = vsyncpa [#allocation5], 0 }
   0x3   :  { %16 = vsyncpa [#allocation8], 0  ;;  %s1173_s24 = smov 0   ;;  %s1175_s25 = smov 0  }
   0x4   :  { %s1177_s26 = smov 0   ;;  %s1179_s27 = smov 0  }
   0x5 LB: > { %s1192_s28 = sadd.s32 4294967295, %s1122_s27   ;;  %p42_p0 = scmp.ne.s32.totalorder %s1114_s25, %s1110_s24  ;;  %s1122_s27 = sphi %s1179_s27, %s1440_s27   ;;  %s1118_s26 = sphi %s1177_s26, %s1439_s26   ;;  %s1114_s25 = sphi %s1175_s25, %s1438_s25   ;;  %s1110_s24 = sphi %s1173_s24, %s1437_s24  }
   0x6   : > { %p1423_p1 = scmp.eq.s32.totalorder %s1192_s28, 0  ;;  %p707_p2 = scmp.ge.s32.totalorder %s1122_s27, 1 }
   0x7   : > { %p205_p3 = scmp.lt.s32.totalorder %s1122_s27, 3  ;;  %s1124_s8 = smov [#allocation4]  }
   0x8   : > { %p1200_p4 = por %p1423_p1, %p42_p0  ;;  %s217_s9 = sshll.u32 %s1124_s8, 4  ;;  %s1208_s9 = int_to_ptr.vmem [resolvable:$true] %s217_s9 }
   0x9   : > { %p1204_p5 = pnand %p707_p2, %p205_p3  ;;  %s1125_s11 = smov [#allocation6]  }
   0xa   : > { %s1426_s29 = scalar_select %p1200_p4, 1, 0 }
   0xb   : > { %s1427_s30 = scalar_select %p1204_p5, 1, 0 }
   0xc   : > { %p905_p6 = pneg %p1204_p5  ;;  %s233_s12 = sshll.u32 %s1125_s11, 4  ;;  %s1218_s12 = int_to_ptr.vmem [resolvable:$true] %s233_s12 }
   0xd   : > { %s1126_s13 = smov [#allocation7]   ;;  %s966_s17 = scalar_lea.hbm %s1416_s1, 256 }
   0xe   : > { %p1214_p7 = pnand %p905_p6, %p1423_p1  ;;  %s1220_s14 = sshll.u32 %s1126_s13, 4  ;;  %s250_s14 = int_to_ptr.vmem [resolvable:$true] %s1220_s14 }
   0xf   : > { %p967_p8 = scmp.ne.s32.totalorder %s1416_s1, %s966_s17  ;;  %p973_p12 = scmp.lt.u32.totalorder %s966_s17, %s1416_s1 }
  0x10   : > { %p1230_p9 = pneg %p1214_p7 }
  0x12   : > { %p969_p10 = pnand %p1230_p9, %p967_p8 }
  0x14   : > { %p970_p11 = pneg %p969_p10 }
  0x16   : > { %p975_p13 = pnand %p973_p12, %p970_p11 }
  0x18   : > { %978 = shalt.err (!%p975_p13)
}
  0x19   : > { %s979_s23 = scalar_lea.vmem %s1208_s9, 256  ;;  %p987_p6 = scmp.lt.s32.totalorder %s1208_s9, %s1208_s9 }
  0x1a   : > { %p980_p0 = scmp.ne.s32.totalorder %s1208_s9, %s979_s23  ;;  %p988_p1 = scmp.lt.s32.totalorder %s979_s23, %s979_s23 }
  0x1c   : > { %p982_p2 = pnand %p980_p0, %p1230_p9  ;;  %p989_p8 = por %p988_p1, %p987_p6 }
  0x1e   : > { %p983_p3 = pneg %p982_p2 }
  0x20   : > { %p990_p10 = pnand %p989_p8, %p983_p3 }
  0x22   : > { %993 = shalt.err (!%p990_p10)
}
  0x23   : > { %s1127_s24 = smov 128   ;;  %s1128_s8 = smov 8  }
  0x24   : > { %908 = dma.hbm_to_vmem [thread:$0]  (!%p1214_p7), %s1416_s1, 256, %s1208_s9, [#allocation5], %s1127_s24, %s1127_s24, %s1128_s8  }
  0x25   : > { %s994_s17 = scalar_lea.hbm %s1418_s3, 2048 }
  0x26   : > { %p995_p1 = scmp.ne.s32.totalorder %s1418_s3, %s994_s17  ;;  %p1001_p13 = scmp.lt.u32.totalorder %s994_s17, %s1418_s3 }
  0x28   : > { %p997_p11 = pnand %p995_p1, %p1230_p9 }
  0x2a   : > { %p998_p12 = pneg %p997_p11 }
  0x2c   : > { %p1003_p0 = pnand %p1001_p13, %p998_p12 }
  0x2e   : > { %1006 = shalt.err (!%p1003_p0)
}
  0x2f   : > { %s1007_s9 = scalar_lea.vmem %s1218_s12, 2048  ;;  %p1015_p8 = scmp.lt.s32.totalorder %s1218_s12, %s1218_s12 }
  0x30   : > { %p1008_p2 = scmp.ne.s32.totalorder %s1218_s12, %s1007_s9  ;;  %p1016_p10 = scmp.lt.s32.totalorder %s1007_s9, %s1007_s9 }
  0x32   : > { %p1010_p3 = pnand %p1008_p2, %p1230_p9  ;;  %p1017_p1 = por %p1016_p10, %p1015_p8 }
  0x34   : > { %p1011_p6 = pneg %p1010_p3 }
  0x36   : > { %p1018_p11 = pnand %p1017_p1, %p1011_p6 }
  0x38   : > { %1021 = shalt.err (!%p1018_p11)
}
  0x39   : > { %911 = dma.hbm_to_vmem [thread:$0]  (!%p1214_p7), %s1418_s3, 2048, %s1218_s12, [#allocation5], %s1127_s24, %s1127_s24, %s1128_s8  }
  0x3a   : > { %s1022_s16 = scalar_lea.hbm %s1420_s5, 2048 }
  0x3b   : > { %p1023_p12 = scmp.ne.s32.totalorder %s1420_s5, %s1022_s16  ;;  %p1029_p2 = scmp.lt.u32.totalorder %s1022_s16, %s1420_s5 }
  0x3d   : > { %p1025_p13 = pnand %p1023_p12, %p1230_p9 }
  0x3f   : > { %p1026_p0 = pneg %p1025_p13 }
  0x41   : > { %p1031_p3 = pnand %p1029_p2, %p1026_p0 }
  0x43   : > { %1034 = shalt.err (!%p1031_p3)
}
  0x44   : > { %s1035_s22 = scalar_lea.vmem %s250_s14, 2048  ;;  %p1043_p1 = scmp.lt.s32.totalorder %s250_s14, %s250_s14 }
  0x45   : > { %p1036_p6 = scmp.ne.s32.totalorder %s250_s14, %s1035_s22  ;;  %p1044_p11 = scmp.lt.s32.totalorder %s1035_s22, %s1035_s22 }
  0x47   : > { %p1038_p8 = pnand %p1036_p6, %p1230_p9  ;;  %p1045_p4 = por %p1044_p11, %p1043_p1 }
  0x49   : > { %p1039_p10 = pneg %p1038_p8 }
  0x4b   : > { %p1046_p5 = pnand %p1045_p4, %p1039_p10 }
  0x4d   : > { %1049 = shalt.err (!%p1046_p5)
}
  0x4e   : > { %914 = dma.hbm_to_vmem [thread:$0]  (!%p1214_p7), %s1420_s5, 2048, %s250_s14, [#allocation8], %s1127_s24, %s1127_s24, %s1128_s8  }
  0x4f   : > { %s1303_s20 = sadd.s32 1, %s1122_s27   ;;  %s29_s23 = sadd.s32 1, %s1118_s26 }
  0x50   : > { %s26_s10 = ssub.s32 %s1122_s27, %s1303_s20  ;;  %p36_p5 = scmp.ne.s32.totalorder %s1118_s26, %s1114_s25 }
  0x51   : > { %p27_p4 = scmp.eq.s32.totalorder %s26_s10, 0  ;;  %p37_p9 = scmp.eq.s32.totalorder %s1122_s27, 0 }
  0x52   : > { %p922_p12 = scmp.lt.s32.totalorder %s1122_s27, 2  ;;  %s266_s13 = sand.u32 1, %s1118_s26  }
  0x53   : > { %s1313_s11 = scalar_select %p27_p4, %s1118_s26, %s29_s23  }
  0x54   : > { %p38_p13 = por %p37_p9, %p36_p5  ;;  %s712_s15 = sshll.u32 %s266_s13, 3 }
  0x55   : > { %s713_s16 = sshll.u32 %s1122_s27, 7  ;;  %s270_s14 = scalar_lea.vmem [#allocation2], %s712_s15 }
  0x56   : > { %s1320_s19 = scalar_lea.hbm %s1415_s0, %s713_s16  ;;  %s277_s24 = sshll.u32 %s270_s14, 4  ;;  %s1322_s24 = int_to_ptr.vmem [resolvable:$true] %s277_s24 }
  0x57   : > { %p1324_p7 = pnand %p922_p12, %p38_p13  ;;  %s267_s27 = scalar_lea.sflag [#allocation3], %s266_s13 }
  0x58   : > { %s1050_s21 = scalar_lea.hbm %s1320_s19, 128  ;;  %s1055_s9 = scalar_lea.hbm %s1415_s0, 256 }
  0x59   : > { %p1051_p0 = scmp.ne.s32.totalorder %s1320_s19, %s1050_s21  ;;  %p1052_p2 = pneg %p1324_p7 }
  0x5a   : > { %p1056_p8 = scmp.lt.u32.totalorder %s1320_s19, %s1415_s0  ;;  %p1057_p10 = scmp.lt.u32.totalorder %s1055_s9, %s1050_s21 }
  0x5b   : > { %p1053_p3 = pnand %p1052_p2, %p1051_p0  ;;  %p1059_p11 = scmp.lt.u32.totalorder %s1050_s21, %s1320_s19 }
  0x5c   : > { %p1058_p1 = por %p1057_p10, %p1056_p8 }
  0x5d   : > { %p1054_p6 = pneg %p1053_p3 }
  0x5e   : > { %p1060_p4 = por %p1059_p11, %p1058_p1 }
  0x60   : > { %p1061_p5 = pnand %p1060_p4, %p1054_p6 }
  0x62   : > { %1064 = shalt.err (!%p1061_p5)
}
  0x63   : > { %s1065_s13 = scalar_lea.vmem %s1322_s24, 128  ;;  %s1129_s15 = smov [#allocation2]  }
  0x64   : > { %p1066_p9 = scmp.ne.s32.totalorder %s1322_s24, %s1065_s13  ;;  %s1070_s16 = sshll.u32 %s1129_s15, 4  ;;  %s1071_s16 = int_to_ptr.vmem [resolvable:$false] %s1070_s16 }
  0x65   : > { %s1072_s17 = scalar_lea.vmem %s1071_s16, 256  ;;  %p1073_p0 = scmp.lt.s32.totalorder %s1322_s24, %s1071_s16 }
  0x66   : > { %p1068_p12 = pnand %p1066_p9, %p1052_p2  ;;  %p1074_p3 = scmp.lt.s32.totalorder %s1072_s17, %s1065_s13 }
  0x68   : > { %p1069_p13 = pneg %p1068_p12  ;;  %p1075_p8 = por %p1074_p3, %p1073_p0 }
  0x6a   : > { %p1076_p10 = pnand %p1075_p8, %p1069_p13 }
  0x6c   : > { %1079 = shalt.err (!%p1076_p10)
}
  0x6d   : > { %918 = dma.hbm_to_vmem [thread:$0]  (!%p1324_p7), %s1320_s19, 128, %s1322_s24, %s267_s27  }
  0x6e   : > { %p1431_p6 = scmp.ne.s32.totalorder %s1427_s30, 0 }
  0x6f   : > { %s288_s18 = sand.u32 (!%p1431_p6), 1, %s1114_s25   ;;  %p1432_p2 = scmp.ne.s32.totalorder (!%p1431_p6), %s1426_s29, 0 }
  0x70   : > { %286 = sbr.rel (%p1431_p6) target bundleno = 779 (0x30b), region = 48  ;;  %s715_s14 = sshll.u32 (!%p1431_p6), %s288_s18, 3 }
  0x71   : > { %s289_s21 = scalar_lea.sflag (!%p1431_p6), [#allocation3], %s288_s18  ;;  %s292_s22 = scalar_lea.vmem (!%p1431_p6), [#allocation2], %s715_s14 }
  0x77   : > { %1097 = dma.done.wait (%p1432_p2), %s289_s21, 128  }
  0x78   : > { %1099 = vsyncadd (%p1432_p2), %s289_s21, 4294967168  ;;  %p1433_p1 = scmp.eq.s32.totalorder %s1192_s28, 0 }
  0x7a   : > { %1101 = dma.done.wait (%p1433_p1), [#allocation5], 2304   ;;  %p1434_p11 = pmov %p1433_p1 }
  0x7b   : > { %p1435_p7 = pmov %p1433_p1 }
  0x7c   : > { %1103 = vsyncadd (%p1434_p11), [#allocation5], 4294964992 }
  0x7d   : > { %1105 = dma.done.wait (%p1435_p7), [#allocation8], 2048   ;;  %p1436_p4 = pmov %p1433_p1 }
  0x7e   : > { %v1130_v0 = vmov 0.0|0.0   ;;  %vm1131_vm0 = vmmov 0   ;;  %v1132_v1 = vmov 0.0   ;;  %v339_v2 = vld [vmem:[#allocation4] sm:$0xff]  ;;  %v340_v3 = vld [vmem:[#allocation4 + $0x8] sm:$0xff]  ;;  %v423_v5 = vld [vmem:[#allocation6] sm:$0xff] }
  0x7f   : > { %1107 = vsyncadd (%p1436_p4), [#allocation8], 4294965248  ;;  %840 = vmatprep.subr.bf16.mxu0 %v1130_v0  ;;  %767 = vmatprep.mubr.msk.f32.mxu0 %vm1131_vm0, %v1132_v1  ;;  %v841_v4 = vpack.c.bf16 %v340_v3, %v339_v2  ;;  %v424_v6 = vld [vmem:[#allocation6 + $0x8] sm:$0xff]  ;;  %v425_v7 = vld [vmem:[#allocation6 + $0x10] sm:$0xff]  ;;  %vm348_vm1 = vcmask 130048   ;;  %p334_p5 = scmp.lt.s32.totalorder %s1192_s28, 1 }
  0x80   : > { %843 = vmatprep.subr.bf16.mxu1 %v1130_v0  ;;  %802 = vmatprep.mubr.msk.f32.mxu1 %vm1131_vm0, %v1132_v1  ;;  %v844_v8 = vpack.c.bf16 %v424_v6, %v423_v5  ;;  %v426_v9 = vld [vmem:[#allocation6 + $0x18] sm:$0xff]  ;;  %v338_v10 = vld [vmem:[%s292_s22] sm:$0xff]  ;;  %v429_v15 = vld [vmem:[#allocation6 + $0x30] sm:$0xff]  ;;  %vm610_vm2 = vcmask 31744  }
  0x81   : > { %842 = vmatpush3.bf16.msra.mxu0 %v841_v4  ;;  %v847_v11 = vpack.c.bf16 %v426_v9, %v425_v7  ;;  %v427_v12 = vld [vmem:[#allocation6 + $0x20] sm:$0xff]  ;;  %v428_v13 = vld [vmem:[#allocation6 + $0x28] sm:$0xff]  ;;  %v430_v16 = vld [vmem:[#allocation6 + $0x38] sm:$0xff]  ;;  %s1442_s28 = smov (!%p334_p5, %s1192_s28), 1 }
  0x82   : > { %845 = vmatpush3.bf16.msra.mxu1 %v844_v8  ;;  %867 = vmatprep.subr.bf16.mxu0 %v1130_v0  ;;  %v850_v14 = vpack.c.bf16 %v428_v13, %v427_v12  ;;  %v853_v17 = vpack.c.bf16 %v430_v16, %v429_v15  ;;  %v431_v18 = vld [vmem:[#allocation6 + $0x40] sm:$0xff]  ;;  %v432_v19 = vld [vmem:[#allocation6 + $0x48] sm:$0xff]  ;;  %v433_v21 = vld [vmem:[#allocation6 + $0x50] sm:$0xff]  ;;  %s719_s8 = sshll.u32 %s1442_s28, 3 }
  0x83   : > { %846 = vmatprep.subr.bf16.mxu1 %v1130_v0  ;;  %v856_v20 = vpack.c.bf16 %v432_v19, %v431_v18  ;;  %v434_v22 = vld [vmem:[#allocation6 + $0x58] sm:$0xff]  ;;  %v435_v24 = vld [vmem:[#allocation6 + $0x60] sm:$0xff]  ;;  %v436_v25 = vld [vmem:[#allocation6 + $0x68] sm:$0xff]  ;;  %s337_s23 = scalar_lea.vmem %s1422_s7, %s719_s8 }
  0x84   : > { %768 = vmatmul.mubr.msk.f32.vlgmr.msra.gmra.mrb[0].mxu0 %vm348_vm1, %v338_v10  ;;  %v859_v23 = vpack.c.bf16 %v434_v22, %v433_v21  ;;  %v862_v26 = vpack.c.bf16 %v436_v25, %v435_v24  ;;  %v437_v27 = vld [vmem:[#allocation6 + $0x70] sm:$0xff]  ;;  %v438_v28 = vld [vmem:[#allocation6 + $0x78] sm:$0xff]  ;;  %v517_v30 = vld [vmem:[#allocation7] sm:$0xff] }
  0x85   : > { %837 = vmatprep.mubr.msk.f32.mxu0 %vm1131_vm0, %v1132_v1  ;;  %v865_v29 = vpack.c.bf16 %v438_v28, %v437_v27  ;;  %v518_v31 = vld [vmem:[#allocation7 + $0x8] sm:$0xff]  ;;  %v519_v32 = vld [vmem:[#allocation7 + $0x10] sm:$0xff]  ;;  %v520_v34 = vld [vmem:[#allocation7 + $0x18] sm:$0xff] }
  0x86   : > { %848 = vmatpush3.bf16.msra.mxu1 %v847_v11  ;;  %v868_v33 = vpack.c.bf16 %v518_v31, %v517_v30  ;;  %v871_v35 = vpack.c.bf16 %v520_v34, %v519_v32  ;;  %v521_v36 = vld [vmem:[#allocation7 + $0x20] sm:$0xff]  ;;  %v522_v37 = vld [vmem:[#allocation7 + $0x28] sm:$0xff]  ;;  %v523_v39 = vld [vmem:[#allocation7 + $0x30] sm:$0xff] }
  0x87   : > { %849 = vmatprep.subr.bf16.mxu1 %v1130_v0  ;;  %v874_v38 = vpack.c.bf16 %v522_v37, %v521_v36  ;;  %v524_v40 = vld [vmem:[#allocation7 + $0x38] sm:$0xff]  ;;  %v525_v42 = vld [vmem:[#allocation7 + $0x40] sm:$0xff]  ;;  %v526_v43 = vld [vmem:[#allocation7 + $0x48] sm:$0xff] }
  0x88   : > { %869 = vmatpush3.bf16.msra.mxu0 %v868_v33  ;;  %v877_v41 = vpack.c.bf16 %v524_v40, %v523_v39  ;;  %v880_v44 = vpack.c.bf16 %v526_v43, %v525_v42  ;;  %v527_v45 = vld [vmem:[#allocation7 + $0x50] sm:$0xff]  ;;  %v528_v46 = vld [vmem:[#allocation7 + $0x58] sm:$0xff]  ;;  %v529_v48 = vld [vmem:[#allocation7 + $0x60] sm:$0xff] }
  0x89   : > { %870 = vmatprep.subr.bf16.mxu0 %v1130_v0  ;;  %v883_v47 = vpack.c.bf16 %v528_v46, %v527_v45  ;;  %v530_v49 = vld [vmem:[#allocation7 + $0x68] sm:$0xff]  ;;  %v720_v51 = vld [vmem:[%s1417_s2] ss:$0 sm:$0xff]  ;;  %v531_v56 = vld [vmem:[#allocation7 + $0x70] sm:$0xff] }
  0x8a   : > { %851 = vmatpush3.bf16.msra.mxu1 %v850_v14  ;;  %v886_v50 = vpack.c.bf16 %v530_v49, %v529_v48  ;;  %v532_v57 = vld [vmem:[#allocation7 + $0x78] sm:$0xff]  ;;  %v722_v59 = vld [vmem:[%s1419_s4] ss:$0 sm:$0xff] }
  0x8b   : > { %852 = vmatprep.subr.bf16.mxu1 %v1130_v0  ;;  %v889_v58 = vpack.c.bf16 %v532_v57, %v531_v56 }
  0x8c   : > { %872 = vmatpush3.bf16.msra.mxu0 %v871_v35 }
  0x8d   : > { %873 = vmatprep.subr.bf16.mxu0 %v1130_v0 }
  0x8e   : > { %854 = vmatpush3.bf16.msra.mxu1 %v853_v17 }
  0x8f   : > { %855 = vmatprep.subr.bf16.mxu1 %v1130_v0 }
  0x90   : > { %875 = vmatpush3.bf16.msra.mxu0 %v874_v38 }
  0x91   : > { %876 = vmatprep.subr.bf16.mxu0 %v1130_v0 }
  0x92   : > { %857 = vmatpush3.bf16.msra.mxu1 %v856_v20 }
  0x93   : > { %858 = vmatprep.subr.bf16.mxu1 %v1130_v0 }
  0x94   : > { %878 = vmatpush3.bf16.msra.mxu0 %v877_v41 }
  0x95   : > { %879 = vmatprep.subr.bf16.mxu0 %v1130_v0 }
  0x96   : > { %860 = vmatpush3.bf16.msra.mxu1 %v859_v23 }
  0x97   : > { %861 = vmatprep.subr.bf16.mxu1 %v1130_v0 }
  0x98   : > { %881 = vmatpush3.bf16.msra.mxu0 %v880_v44 }
  0x99   : > { %882 = vmatprep.subr.bf16.mxu0 %v1130_v0 }
  0x9a   : > { %863 = vmatpush3.bf16.msra.mxu1 %v862_v26 }
  0x9b   : > { %864 = vmatprep.subr.bf16.mxu1 %v1130_v0 }
  0x9c   : > { %884 = vmatpush3.bf16.msra.mxu0 %v883_v47 }
  0x9d   : > { %885 = vmatprep.subr.bf16.mxu0 %v1130_v0 }
  0x9e   : > { %866 = vmatpush3.bf16.msra.mxu1 %v865_v29 }
  0xa0   : > { %887 = vmatpush3.bf16.msra.mxu0 %v886_v50 }
  0xa1   : > { %888 = vmatprep.subr.bf16.mxu0 %v1130_v0  ;;  %v723_v0 = vld [vmem:[%s1421_s6] ss:$0 sm:$0xff] }
  0xa4   : > { %890 = vmatpush3.bf16.msra.mxu0 %v889_v58 }
 0x157   : > { %v418_v52 = vpop.f32.mrb[0].mxu0 }
 0x158   : > { %v419_v53 = vadd.f32 %v720_v51, %v418_v52  ;;  %v769_v54 = vpop.f32.mrb[1].mxu0 }
 0x15a   : > { %v422_v55 = vmax.f32 %v419_v53, 0.0 }
 0x15c   : > { %803 = vmatmul.mubr.f32.vlgmr.msra.gmra.mrb[0].mxu1 %v422_v55 }
 0x22f   : > { %v512_v60 = vpop.f32.mrb[0].mxu1 }
 0x230   : > { %v513_v61 = vadd.f32 %v722_v59, %v512_v60  ;;  %v804_v62 = vpop.f32.mrb[1].mxu1 }
 0x232   : > { %v516_v63 = vmax.f32 %v513_v61, 0.0 }
 0x234   : > { %838 = vmatmul.mubr.f32.vlgmr.msra.gmra.mrb[2].mxu0 %v516_v63 }
 0x307   : > { %v606_v1 = vpop.f32.mrb[2].mxu0 }
 0x308   : > { %v607_v2 = vadd.f32 %v723_v0, %v606_v1  ;;  %v839_v3 = vpop.f32.mrb[3].mxu0 }
 0x30a   : > { %611 = vst.msk [vmem:[%s337_s23] sm:$0xff] %vm610_vm2, %v607_v2 }
 0x30b PF: > { %p19_p9 = scmp.ge.s32.totalorder %s1303_s20, 4   ;;  %s1437_s24 = smov %s1114_s25 }
 0x30c   : > { %s1438_s25 = smov %s1118_s26  ;;  %s1439_s26 = smov %s1313_s11 }
 0x30d   : > { %s1440_s27 = smov %s1303_s20  ;;  %21 = sbr.rel (!%p19_p9) target bundleno = 5 (0x5), region = 100 }
 0x314   :  { %631 = vsyncpa [#allocation3], 1 }
 0x315   :  { %633 = vsyncpa [#allocation3 + $0x1], 1 }
 0x316   :  { %634 = vsyncpa [#allocation5], 1 }
 0x317   :  { %635 = vsyncpa [#allocation8], 1 }

</bundles_post_ra>
